<compile_context>
chip_gen: v7x
topology: tpu7x:2x2x1
jax: 0.10.0
libtpu: 0.0.40
codegen_flags: <defaults>
</compile_context>

<pallas_src>
import functools
import math

import jax
import jax.numpy as jnp
from jax.experimental import pallas as pl
from jax.experimental.pallas import tpu as pltpu


def _round_up(x, m):
    return ((x + m - 1) // m) * m


def _rbf_kernel(d_ref, e_ref, c_ref, o_ref, *, gamma):
    # d_ref: (tile_rows, R) f32 distances, R packed per output row.
    # e_ref: (R, R*bins) f32 constant 0/1 expansion matrix (idle MXU).
    # c_ref: (1, R*bins) f32 centers tiled across the packed lanes.
    # o_ref: (tile_rows, R*bins) output -- every store is a full-width vst.
    d = d_ref[...]
    e = e_ref[...]
    # Split d into three exactly-bf16-representable pieces so the 0/1 selection
    # matmul reproduces d exactly for any MXU f32-precision mode (1/3/6 bf16
    # passes or native f32 all give the same, exact, result).
    d_hi = d.astype(jnp.bfloat16).astype(jnp.float32)
    r1 = d - d_hi
    d_mid = r1.astype(jnp.bfloat16).astype(jnp.float32)
    d_lo = r1 - d_mid
    d_exp = (jnp.dot(d_hi, e, preferred_element_type=jnp.float32)
             + jnp.dot(d_mid, e, preferred_element_type=jnp.float32)
             + jnp.dot(d_lo, e, preferred_element_type=jnp.float32))
    diff = d_exp - c_ref[...]                       # (tile_rows, R*bins)
    o_ref[...] = jnp.exp(-gamma * diff * diff).astype(o_ref.dtype)


def rbf_expansion(distance, *, vmin=0.0, vmax=8.0, bins=40, lengthscale=None,
                  out_dtype=jnp.bfloat16, max_tile_rows=None):
    """distance: (N,) -> (N, bins), matching RBFExpansion.forward.

    out_dtype=jnp.bfloat16 (default) halves HBM write traffic; pass
    jnp.float32 to reproduce the module's dtype exactly (values are always
    computed in f32).
    """
    n = distance.shape[0]

    # gamma exactly as RBFExpansion.__init__, in pure Python (no device sync).
    step = (vmax - vmin) / (bins - 1) if bins > 1 else 1.0
    if lengthscale is None:
        gamma = 1.0 / step               # lengthscale = mean(diff(centers)) == step
    else:
        gamma = 1.0 / float(lengthscale) ** 2

    # Lane packing: R consecutive rows of the (N, bins) output share one
    # lane-dense row of width R*bins (a multiple of 128).
    R = 128 // math.gcd(bins, 128)
    lanes = R * bins
    itemsize = jnp.dtype(out_dtype).itemsize
    align = {4: 8, 2: 16, 1: 32}.get(itemsize, 8)   # sublane alignment per dtype

    # Pad N only to a multiple of align*R (<= align*R - 1 junk rows), never to
    # a tile multiple.
    n_pad = _round_up(max(n, 1), align * R)
    d = distance.astype(jnp.float32)
    if n_pad != n:
        d = jnp.pad(d, (0, n_pad - n))
    n_rows = n_pad // R
    d_packed = d.reshape(n_rows, R)

    # Exact centers (same values as the torch linspace buffer), tiled across
    # the packed lanes: c_row[0, r*bins + j] = centers[j].
    centers = jnp.linspace(vmin, vmax, bins, dtype=jnp.float32)
    c_row = jnp.tile(centers, R).reshape(1, lanes)

    # Constant 0/1 expansion matrix: (d_packed @ E)[t, r*bins + j] == d_packed[t, r].
    E = (jnp.arange(R, dtype=jnp.int32)[:, None]
         == (jnp.arange(lanes, dtype=jnp.int32)[None, :] // bins)
         ).astype(jnp.float32)

    # Tile sizing: ~1 MiB output block (past the mem-bound knee), and >= 2 grid
    # steps whenever possible so both v7x TensorCores get work.
    if max_tile_rows is None:
        max_tile_rows = max(align, ((1 << 20) // (lanes * itemsize)) // 8 * 8)
    num_steps = max(2, pl.cdiv(n_rows, max_tile_rows))
    tile_rows = _round_up(pl.cdiv(n_rows, num_steps), align)
    num_blocks = pl.cdiv(n_rows, tile_rows)    # partial last block is masked by Pallas

    cost = pl.CostEstimate(
        flops=3 * n_pad * bins,
        transcendentals=n_pad * bins,
        bytes_accessed=4 * n_pad + itemsize * n_pad * bins + 4 * (R + 1) * lanes,
    )

    kernel = functools.partial(_rbf_kernel, gamma=float(gamma))

    out_packed = pl.pallas_call(
        kernel,
        out_shape=jax.ShapeDtypeStruct((n_rows, lanes), out_dtype),
        grid_spec=pltpu.PrefetchScalarGridSpec(
            num_scalar_prefetch=0,
            grid=(num_blocks,),
            in_specs=[
                pl.BlockSpec((tile_rows, R), lambda i: (i, 0)),
                pl.BlockSpec((R, lanes), lambda i: (0, 0)),   # resident constant
                pl.BlockSpec((1, lanes), lambda i: (0, 0)),   # resident constant
            ],
            out_specs=pl.BlockSpec((tile_rows, lanes), lambda i: (i, 0)),
        ),
        compiler_params=pltpu.CompilerParams(
            dimension_semantics=("parallel",)),
        cost_estimate=cost,
    )(d_packed, E, c_row)

    # Free reshape (same bytes, row-major).  The [:n] slice (a copy) only
    # happens when N wasn't already alignment-sized.
    out = out_packed.reshape(n_pad, bins)
    return out[:n] if n_pad != n else out


if __name__ == "__main__":
    vmin, vmax, bins = 0.0, 8.0, 40
    k1, k2 = jax.random.split(jax.random.PRNGKey(0))

    centers = jnp.linspace(vmin, vmax, bins, dtype=jnp.float32)
    # torch-style gamma (mean of diffs) for the reference; validates that the
    # pure-Python gamma inside the wrapper matches it.
    gamma_default = 1.0 / float(jnp.mean(jnp.diff(centers)))

    # --- Test 1: default bf16 output, N not alignment-sized -> exercises the
    # small pad + trailing-slice path and a 2-step "parallel" grid.
    n1 = 3000
    d1 = jax.random.uniform(k1, (n1,), dtype=jnp.float32, minval=vmin, maxval=vmax)
    ref1 = jnp.exp(-gamma_default * (d1[:, None] - centers[None, :]) ** 2)
    out1 = jax.block_until_ready(
        rbf_expansion(d1, vmin=vmin, vmax=vmax, bins=bins))
    assert out1.shape == (n1, bins) and out1.dtype == jnp.bfloat16
    assert jnp.allclose(out1.astype(jnp.float32), ref1, atol=1e-2), "bf16 path mismatch"

    # --- Test 2: f32 output, explicit lengthscale, tiny tiles -> multi-step
    # grid with a masked partial last block; N aligned so no trailing slice.
    n2, ls = 640, 0.5
    d2 = jax.random.uniform(k2, (n2,), dtype=jnp.float32, minval=vmin, maxval=vmax)
    ref2 = jnp.exp(-(1.0 / ls ** 2) * (d2[:, None] - centers[None, :]) ** 2)
    out2 = jax.block_until_ready(
        rbf_expansion(d2, vmin=vmin, vmax=vmax, bins=bins, lengthscale=ls,
                      out_dtype=jnp.float32, max_tile_rows=16))
    assert out2.shape == (n2, bins) and out2.dtype == jnp.float32
    assert jnp.allclose(out2, ref2, atol=1e-4), "f32 path mismatch"

    print("KERNEL_OK")
</pallas_src>

<mosaic_0001>
module attributes {stable_mosaic.version = 11 : i64} {
  func.func @_rbf_kernel(%arg0: i32, %arg1: memref<96x16xf32, #tpu.memory_space<vmem>>, %arg2: memref<16x640xf32, #tpu.memory_space<vmem>>, %arg3: memref<1x640xf32, #tpu.memory_space<vmem>>, %arg4: memref<96x640xbf16, #tpu.memory_space<vmem>>) attributes {dimension_semantics = [#tpu.dimension_semantics<parallel>], iteration_bounds = array<i64: 2>, scalar_prefetch = 0 : i64, scratch_operands = 0 : i64, tpu.core_type = #tpu.core_type<tc>, window_params = [{transform_indices = @transform_0, window_bounds = array<i64: 96, 16>}, {pipeline_mode = #tpu.pipeline_mode<synchronous>, transform_indices = @transform_1, window_bounds = array<i64: 16, 640>}, {pipeline_mode = #tpu.pipeline_mode<synchronous>, transform_indices = @transform_2, window_bounds = array<i64: 1, 640>}, {transform_indices = @transform_3, window_bounds = array<i64: 96, 640>}]} {
    %c0 = arith.constant 0 : index
    %c0_0 = arith.constant 0 : index
    %0 = vector.load %arg1[%c0, %c0_0] : memref<96x16xf32, #tpu.memory_space<vmem>>, vector<96x16xf32>
    %c0_1 = arith.constant 0 : index
    %c0_2 = arith.constant 0 : index
    %1 = vector.load %arg2[%c0_1, %c0_2] : memref<16x640xf32, #tpu.memory_space<vmem>>, vector<16x640xf32>
    %2 = arith.truncf %0 : vector<96x16xf32> to vector<96x16xbf16>
    %3 = arith.extf %2 : vector<96x16xbf16> to vector<96x16xf32>
    %4 = arith.subf %0, %3 : vector<96x16xf32>
    %5 = arith.truncf %4 : vector<96x16xf32> to vector<96x16xbf16>
    %6 = arith.extf %5 : vector<96x16xbf16> to vector<96x16xf32>
    %7 = arith.subf %4, %6 : vector<96x16xf32>
    %cst = arith.constant dense<0.000000e+00> : vector<96x640xf32>
    %8 = tpu.matmul %3, %1, %cst {dimension_numbers = #tpu.dot_dimension_numbers<[1], [0], [0], [1], [0, 0, 1, 1], [], []>} : vector<96x16xf32>, vector<16x640xf32>, vector<96x640xf32> -> vector<96x640xf32>
    %cst_3 = arith.constant dense<0.000000e+00> : vector<96x640xf32>
    %9 = tpu.matmul %6, %1, %cst_3 {dimension_numbers = #tpu.dot_dimension_numbers<[1], [0], [0], [1], [0, 0, 1, 1], [], []>} : vector<96x16xf32>, vector<16x640xf32>, vector<96x640xf32> -> vector<96x640xf32>
    %10 = arith.addf %8, %9 : vector<96x640xf32>
    %cst_4 = arith.constant dense<0.000000e+00> : vector<96x640xf32>
    %11 = tpu.matmul %7, %1, %cst_4 {dimension_numbers = #tpu.dot_dimension_numbers<[1], [0], [0], [1], [0, 0, 1, 1], [], []>} : vector<96x16xf32>, vector<16x640xf32>, vector<96x640xf32> -> vector<96x640xf32>
    %12 = arith.addf %10, %11 : vector<96x640xf32>
    %c0_5 = arith.constant 0 : index
    %c0_6 = arith.constant 0 : index
    %13 = vector.load %arg3[%c0_5, %c0_6] : memref<1x640xf32, #tpu.memory_space<vmem>>, vector<1x640xf32>
    %14 = vector.broadcast %13 : vector<1x640xf32> to vector<96x640xf32>
    %15 = arith.subf %12, %14 : vector<96x640xf32>
    %cst_7 = arith.constant -4.875000e+00 : f32
    %16 = vector.broadcast %cst_7 : f32 to vector<96x640xf32>
    %17 = arith.mulf %16, %15 : vector<96x640xf32>
    %18 = arith.mulf %17, %15 : vector<96x640xf32>
    %19 = math.exp %18 : vector<96x640xf32>
    %20 = arith.truncf %19 : vector<96x640xf32> to vector<96x640xbf16>
    %c0_8 = arith.constant 0 : index
    %c0_9 = arith.constant 0 : index
    %21 = vector.load %arg4[%c0_8, %c0_9] : memref<96x640xbf16, #tpu.memory_space<vmem>>, vector<96x640xbf16>
    tpu.vector_store %arg4[%c0_8, %c0_9], %20 {strides = array<i32>} : memref<96x640xbf16, #tpu.memory_space<vmem>>, vector<96x640xbf16>,
    return
  }
  func.func @transform_0(%arg0: i32) -> (i32, i32) {
    %c0_i32 = arith.constant 0 : i32
    %c0_i32_0 = arith.constant 0 : i32
    return %arg0, %c0_i32 : i32, i32
  }
  func.func @transform_1(%arg0: i32) -> (i32, i32) {
    %c0_i32 = arith.constant 0 : i32
    %c0_i32_0 = arith.constant 0 : i32
    %c0_i32_1 = arith.constant 0 : i32
    return %c0_i32, %c0_i32_0 : i32, i32
  }
  func.func @transform_2(%arg0: i32) -> (i32, i32) {
    %c0_i32 = arith.constant 0 : i32
    %c0_i32_0 = arith.constant 0 : i32
    %c0_i32_1 = arith.constant 0 : i32
    return %c0_i32, %c0_i32_0 : i32, i32
  }
  func.func @transform_3(%arg0: i32) -> (i32, i32) {
    %c0_i32 = arith.constant 0 : i32
    %c0_i32_0 = arith.constant 0 : i32
    return %arg0, %c0_i32 : i32, i32
  }
}

</mosaic_0001>

<bundles_post_ra>
// kernel: tpu_custom_call.1
= control target key start
LH: loop header
LB: loop body
LE: loop exit
PB: predicated region body
PF: predicated region fallthrough
CT: control target
= control target key end

     0   :  { %8 = vsyncpa [#allocation3], 0  ;;  %s3775_s0 = inlined_call_operand.vmem [shape: f32[192,16], index: 0, kind: input, shape index: {}]   ;;  %s3776_s1 = inlined_call_operand.vmem [shape: f32[16,640], index: 1, kind: input, shape index: {}]   ;;  %s3777_s2 = inlined_call_operand.vmem [shape: f32[1,640], index: 2, kind: input, shape index: {}]   ;;  %s3778_s3 = inlined_call_operand.hbm [shape: bf16[192,640], index: 3, kind: output, shape index: {}]  }
   0x1   :  { %10 = vsyncpa [#allocation3 + $0x1], 0  ;;  %s2959_s12 = smov 0   ;;  %s2961_s13 = smov 0  }
   0x2   :  { %s2963_s14 = smov 0   ;;  %s2965_s15 = smov 0  }
   0x3 LB: > { %s2980_s16 = sadd.s32 4294967295, %s2933_s15   ;;  %s2252_s17 = sadd.s32 4294967294, %s2933_s15   ;;  %s2933_s15 = sphi %s2965_s15, %s3784_s15   ;;  %s2929_s14 = sphi %s2963_s14, %s3783_s14   ;;  %s2925_s13 = sphi %s2961_s13, %s3782_s13   ;;  %s2921_s12 = sphi %s2959_s12, %s3781_s12  }
   0x4   : > { %s2984_s18 = sadd.s32 1, %s2933_s15   ;;  %s91_s19 = sadd.s32 1, %s2929_s14 }
   0x5   : > { %s88_s20 = ssub.s32 %s2933_s15, %s2984_s18  ;;  %p101_p0 = scmp.ne.s32.totalorder %s2929_s14, %s2925_s13 }
   0x6   : > { %p89_p1 = scmp.eq.s32.totalorder %s88_s20, 0  ;;  %p102_p2 = scmp.eq.s32.totalorder %s2980_s16, 1 }
   0x7   : > { %p107_p3 = scmp.ne.s32.totalorder %s2925_s13, %s2921_s12  ;;  %p108_p4 = scmp.eq.s32.totalorder %s2252_s17, 1 }
   0x8   : > { %s2995_s21 = scalar_select %p89_p1, %s2929_s14, %s91_s19  }
   0x9   : > { %p2997_p5 = por %p102_p2, %p101_p0  ;;  %p3001_p6 = por %p108_p4, %p107_p3 }
   0xa   : > { %p2255_p7 = scmp.ge.s32.totalorder %s2933_s15, 1  ;;  %p141_p8 = scmp.lt.s32.totalorder %s2933_s15, 3 }
   0xc   : > { %p142_p9 = pnand %p2255_p7, %p141_p8 }
   0xd   : > { %v185_v0 = vld [vmem:[%s3776_s1 + $0x8] sm:$0xff] (!%p142_p9)  ;;  %v190_v1 = vld [vmem:[%s3776_s1 + $0x30] sm:$0xff] (!%p142_p9)  ;;  %v184_v2 = vld [vmem:[%s3776_s1] sm:$0xff] (!%p142_p9)  ;;  %s165_s30 = smul.u32 (!%p142_p9), 12, %s2980_s16  ;;  %v2935_v5 = vmov (!%p142_p9), 0.0   ;;  %vm254_vm0 = vcmask (!%p142_p9), 130048  }
   0xe   : > { %145 = sbr.rel (%p142_p9) target bundleno = 482 (0x1e2), region = 32  ;;  %v3017_v3 = vpack.c.bf16 (!%p142_p9), %v190_v1, %v185_v0  ;;  %v189_v4 = vld [vmem:[%s3776_s1 + $0x28] sm:$0xff] (!%p142_p9)  ;;  %355 = vmatprep.mubr.f32.mxu0 (!%p142_p9), %v2935_v5  ;;  %373 = vmatprep.mubr.f32.mxu1 (!%p142_p9), %v2935_v5  ;;  %v187_v6 = vld [vmem:[%s3776_s1 + $0x18] sm:$0xff] (!%p142_p9)  ;;  %v192_v7 = vld [vmem:[%s3776_s1 + $0x40] sm:$0xff] (!%p142_p9)  ;;  %s162_s6 = sand.u32 (!%p142_p9), 1, %s2925_s13  }
   0xf   : > { %v3030_v8 = vpack.c.bf16 (!%p142_p9), %v189_v4, %v184_v2  ;;  %v3032_v9 = vpack.c.bf16 (!%p142_p9), %v192_v7, %v187_v6  ;;  %v188_v10 = vld [vmem:[%s3776_s1 + $0x20] sm:$0xff] (!%p142_p9)  ;;  %v193_v11 = vld [vmem:[%s3776_s1 + $0x48] sm:$0xff] (!%p142_p9)  ;;  %p166_p10 = scmp.lt.s32.totalorder (!%p142_p9), %s165_s30, 23  ;;  %v186_v39 = vld [vmem:[%s3776_s1 + $0x10] sm:$0xff] (!%p142_p9)  ;;  %s3526_s7 = smul.u32 (!%p142_p9), 240, %s162_s6 }
  0x10   : > { %2549 = vmatprep.subr.bf16.mxu0 (!%p142_p9), %v3017_v3  ;;  %2584 = vmatprep.subr.bf16.mxu1 (!%p142_p9), %v3017_v3  ;;  %v3042_v12 = vpack.c.bf16 (!%p142_p9), %v193_v11, %v188_v10  ;;  %v191_v40 = vld [vmem:[%s3776_s1 + $0x38] sm:$0xff] (!%p142_p9)  ;;  %s2714_s9 = smul.u32 (!%p142_p9), 3840, %s2980_s16  ;;  %s3734_s16 = scalar_lea.sflag (!%p142_p9), [#allocation3], %s162_s6 }
  0x11   : > { %2551 = vmatpush1.bf16.msra.mxu0 (!%p142_p9), %v3030_v8  ;;  %2585 = vmatpush1.bf16.msra.mxu1 (!%p142_p9), %v3030_v8  ;;  %v3097_v52 = vpack.c.bf16 (!%p142_p9), %v191_v40, %v186_v39  ;;  %s3542_s8 = scalar_lea.vmem (!%p142_p9), [#allocation2], %s3526_s7  ;;  %s2936_s24 = smov (!%p142_p9), [#allocation2]  }
  0x12   : > { %2553 = vmatprep.subr.bf16.mxu1 (!%p142_p9), %v3032_v9  ;;  %2557 = vmatprep.subr.bf16.mxu0 (!%p142_p9), %v3042_v12  ;;  %s2190_s10 = sshll.u32 (!%p142_p9), %s3542_s8, 4  ;;  %s3725_s19 = scalar_lea.hbm (!%p142_p9), %s3778_s3, %s2714_s9  ;;  %s3727_s10 = int_to_ptr.vmem [resolvable:$true] %s2190_s10 }
  0x13   : > { %s2875_s25 = sshll.u32 (!%p142_p9), %s2936_s24, 4  ;;  %s2876_s25 = int_to_ptr.vmem [resolvable:$false] %s2875_s25 }
  0x14   : > { %p2878_p0 = scmp.lt.s32.totalorder (!%p142_p9), %s3727_s10, %s2876_s25 }
  0x15   : > { %s3786_s30 = smov (!%p166_p10, %s165_s30), 23 }
  0x16   : > { %s2256_s20 = sshll.u32 %s3786_s30, 3 }
  0x17   : > { %s3051_s26 = scalar_lea.vmem %s3775_s0, %s2256_s20  ;;  %s2871_s20 = scalar_lea.vmem %s3727_s10, 3840 }
  0x18   : > { %v172_v13 = vld [vmem:[%s3051_s26] sm:$0xff]  ;;  %v173_v14 = vld [vmem:[%s3051_s26 + $0x8] sm:$0xff]  ;;  %v174_v15 = vld [vmem:[%s3051_s26 + $0x10] sm:$0xff]  ;;  %p2872_p11 = scmp.ne.s32.totalorder %s3727_s10, %s2871_s20 }
  0x19   : > { %v194_v16 = vpack.c.bf16 %v173_v14, %v172_v13  ;;  %v175_v17 = vld [vmem:[%s3051_s26 + $0x18] sm:$0xff]  ;;  %v176_v18 = vld [vmem:[%s3051_s26 + $0x20] sm:$0xff]  ;;  %v177_v19 = vld [vmem:[%s3051_s26 + $0x28] sm:$0xff] }
  0x1a   : > { %v195_v20 = vpack.c.bf16 %v175_v17, %v174_v15  ;;  %v196_v21 = vpack.c.bf16 %v177_v19, %v176_v18  ;;  %v178_v22 = vld [vmem:[%s3051_s26 + $0x30] sm:$0xff]  ;;  %v179_v23 = vld [vmem:[%s3051_s26 + $0x38] sm:$0xff]  ;;  %v180_v31 = vld [vmem:[%s3051_s26 + $0x40] sm:$0xff]  ;;  %p2873_p12 = pnand %p2872_p11, %p2997_p5 }
  0x1b   : > { %v3061_v24 = vunpack.c.l.bf16 %v194_v16  ;;  %v3063_v25 = vunpack.c.h.bf16 %v194_v16  ;;  %v197_v26 = vpack.c.bf16 %v179_v23, %v178_v22  ;;  %v181_v32 = vld [vmem:[%s3051_s26 + $0x48] sm:$0xff]  ;;  %v182_v47 = vld [vmem:[%s3051_s26 + $0x50] sm:$0xff]  ;;  %v183_v48 = vld [vmem:[%s3051_s26 + $0x58] sm:$0xff]  ;;  %s2877_s26 = scalar_lea.vmem %s2876_s25, 7680 }
  0x1c   : > { %v3065_v27 = vunpack.c.l.bf16 %v195_v20  ;;  %v3067_v28 = vunpack.c.h.bf16 %v195_v20  ;;  %v3069_v29 = vunpack.c.l.bf16 %v196_v21  ;;  %v3071_v30 = vunpack.c.h.bf16 %v196_v21  ;;  %p2874_p13 = pneg %p2873_p12  ;;  %p2879_p1 = scmp.lt.s32.totalorder %s2877_s26, %s2871_s20 }
  0x1d   : > { %v212_v33 = vsub.f32 %v172_v13, %v3061_v24  ;;  %v213_v34 = vsub.f32 %v173_v14, %v3063_v25  ;;  %v3077_v35 = vunpack.c.l.bf16 %v197_v26  ;;  %v3079_v36 = vunpack.c.h.bf16 %v197_v26 }
  0x1e   : > { %v214_v37 = vsub.f32 %v174_v15, %v3065_v27  ;;  %v215_v38 = vsub.f32 %v175_v17, %v3067_v28  ;;  %v216_v41 = vsub.f32 %v176_v18, %v3069_v29  ;;  %v217_v42 = vsub.f32 %v177_v19, %v3071_v30  ;;  %p2880_p2 = por %p2879_p1, %p2878_p0 }
  0x1f   : > { %v224_v43 = vpack.c.bf16 %v213_v34, %v212_v33  ;;  %v218_v44 = vsub.f32 %v178_v22, %v3077_v35  ;;  %v219_v45 = vsub.f32 %v179_v23, %v3079_v36  ;;  %v198_v46 = vpack.c.bf16 %v181_v32, %v180_v31 }
  0x20   : > { %v225_v49 = vpack.c.bf16 %v215_v38, %v214_v37  ;;  %v226_v50 = vpack.c.bf16 %v217_v42, %v216_v41  ;;  %v199_v57 = vpack.c.bf16 %v183_v48, %v182_v47  ;;  %p2881_p3 = pnand %p2880_p2, %p2874_p13 }
  0x21   : > { %v3095_v51 = vunpack.c.l.bf16 %v224_v43  ;;  %v227_v53 = vpack.c.bf16 %v219_v45, %v218_v44  ;;  %v3099_v54 = vunpack.c.l.bf16 %v198_v46  ;;  %v3103_v56 = vunpack.c.h.bf16 %v224_v43 }
  0x22   : > { %v3101_v55 = vunpack.c.h.bf16 %v225_v49  ;;  %v3110_v59 = vunpack.c.l.bf16 %v225_v49  ;;  %v3112_v60 = vunpack.c.h.bf16 %v198_v46  ;;  %v3117_v61 = vunpack.c.l.bf16 %v226_v50 }
  0x23   : > { %v3106_v58 = vsub.f32 %v212_v33, %v3095_v51  ;;  %2257 = vmatmul.mubr.msk.f32.vlgmr.msra.gmra.mrb[0].mxu0 %vm254_vm0, %v3095_v51  ;;  %v3119_v62 = vunpack.c.h.bf16 %v226_v50  ;;  %v220_v63 = vsub.f32 %v180_v31, %v3099_v54  ;;  %v3123_v0 = vsub.f32 %v213_v34, %v3103_v56 }
  0x24   : > { %2260 = vmatmul.mubr.msk.f32.vlgmr.msra.gmra.mrb[0].mxu1 %vm254_vm0, %v3101_v55  ;;  %2559 = vmatpush3.bf16.msra.mxu0 %v3042_v12  ;;  %v3127_v1 = vunpack.c.l.bf16 %v227_v53  ;;  %v221_v2 = vsub.f32 %v181_v32, %v3112_v60  ;;  %v3131_v4 = vsub.f32 %v214_v37, %v3110_v59  ;;  %v3134_v6 = vsub.f32 %v215_v38, %v3101_v55 }
  0x25   : > { %2555 = vmatpush1.bf16.msra.mxu1 %v3097_v52  ;;  %361 = vmatprep.mubr.f32.mxu0 %v2935_v5  ;;  %v3138_v7 = vunpack.c.h.bf16 %v227_v53  ;;  %v3140_v10 = vunpack.c.l.bf16 %v199_v57  ;;  %v3143_v11 = vsub.f32 %v216_v41, %v3117_v61  ;;  %v3147_v14 = vunpack.c.h.bf16 %v199_v57 }
  0x26   : > { %379 = vmatprep.mubr.f32.mxu1 %v2935_v5  ;;  %2561 = vmatprep.subr.bf16.mxu0 %v3017_v3  ;;  %v228_v13 = vpack.c.bf16 %v221_v2, %v220_v63  ;;  %v3151_v15 = vsub.f32 %v217_v42, %v3119_v62  ;;  %v3154_v16 = vsub.f32 %v218_v44, %v3127_v1  ;;  %v1622_v42 = vlaneseq }
  0x27   : > { %2258 = vmatmul.mubr.msk.f32.gmra.mrb[2].mxu0 %vm254_vm0, %v3103_v56  ;;  %2565 = vmatprep.subr.bf16.mxu1 %v3032_v9  ;;  %v3161_v17 = vsub.f32 %v219_v45, %v3138_v7  ;;  %v222_v19 = vsub.f32 %v182_v47, %v3140_v10  ;;  %v223_v20 = vsub.f32 %v183_v48, %v3147_v14  ;;  %v3507_v45 = vld [vmem:[%s3777_s2] sm:$0x1f] }
  0x28   : > { %2261 = vmatmul.mubr.msk.f32.gmra.mrb[2].mxu1 %vm254_vm0, %v3117_v61  ;;  %367 = vmatprep.mubr.f32.mxu0 %v2935_v5  ;;  %v3165_v18 = vunpack.c.l.bf16 %v228_v13  ;;  %v3179_v22 = vunpack.c.h.bf16 %v228_v13  ;;  %v3501_v43 = vshrl.u32 %v1622_v42, 7 }
  0x29   : > { %385 = vmatprep.mubr.f32.mxu1 %v2935_v5  ;;  %v229_v23 = vpack.c.bf16 %v223_v20, %v222_v19 }
  0x2a   : > { %v3175_v21 = vsub.f32 %v220_v63, %v3165_v18  ;;  %v3188_v26 = vsub.f32 %v221_v2, %v3179_v22  ;;  %v1624_v44 = vsub.s32 0, %v3501_v43  ;;  %v1628_v46 = vsub.s32 1, %v3501_v43 }
  0x2b   : > { %2259 = vmatmul.mubr.msk.f32.gmra.mrb[4].mxu0 %vm254_vm0, %v3110_v59  ;;  %v3193_v31 = vunpack.c.l.bf16 %v229_v23  ;;  %v3205_v33 = vunpack.c.h.bf16 %v229_v23 }
  0x2c   : > { %2262 = vmatmul.mubr.msk.f32.gmra.mrb[4].mxu1 %vm254_vm0, %v3119_v62  ;;  %2486 = vmatprep.mubr.msk.f32.mxu0 %vm254_vm0, %v3095_v51  ;;  %v3511_v47 = vrot.slane %v3507_v45, %v1624_v44  ;;  %v3514_v48 = vrot.slane %v3507_v45, %v1628_v46 }
  0x2d   : > { %391 = vmatprep.mubr.f32.mxu1 %v2935_v5  ;;  %v3201_v32 = vsub.f32 %v222_v19, %v3193_v31  ;;  %v3213_v34 = vsub.f32 %v223_v20, %v3205_v33 }
  0x2f   : > { %2487 = vmatmul.mubr.msk.f32.vlgmr.msra.gmra.mrb[6].mxu0 %vm254_vm0, %v3103_v56 }
  0x30   : > { %2263 = vmatmul.mubr.msk.f32.gmra.mrb[6].mxu1 %vm254_vm0, %v3127_v1  ;;  %2563 = vmatpush1.bf16.msra.mxu0 %v3030_v8 }
  0x31   : > { %397 = vmatprep.mubr.f32.mxu1 %v2935_v5  ;;  %2489 = vmatprep.mubr.msk.f32.mxu0 %vm254_vm0, %v3110_v59 }
  0x32   : > { %2569 = vmatprep.subr.bf16.mxu0 %v3042_v12 }
  0x33   : > { %2490 = vmatmul.mubr.msk.f32.gmra.mrb[8].mxu0 %vm254_vm0, %v3101_v55 }
  0x34   : > { %2264 = vmatmul.mubr.msk.f32.gmra.mrb[8].mxu1 %vm254_vm0, %v3138_v7  ;;  %2492 = vmatprep.mubr.msk.f32.mxu0 %vm254_vm0, %v3117_v61 }
  0x35   : > { %403 = vmatprep.mubr.f32.mxu1 %v2935_v5 }
  0x37   : > { %2493 = vmatmul.mubr.msk.f32.gmra.mrb[10].mxu0 %vm254_vm0, %v3119_v62 }
  0x38   : > { %2265 = vmatmul.mubr.msk.f32.gmra.mrb[10].mxu1 %vm254_vm0, %v3165_v18  ;;  %2495 = vmatprep.mubr.msk.f32.mxu0 %vm254_vm0, %v3127_v1 }
  0x39   : > { %409 = vmatprep.mubr.f32.mxu1 %v2935_v5 }
  0x3b   : > { %2496 = vmatmul.mubr.msk.f32.gmra.mrb[12].mxu0 %vm254_vm0, %v3138_v7 }
  0x3c   : > { %2266 = vmatmul.mubr.msk.f32.gmra.mrb[12].mxu1 %vm254_vm0, %v3179_v22  ;;  %2498 = vmatprep.mubr.msk.f32.mxu0 %vm254_vm0, %v3165_v18 }
  0x3d   : > { %415 = vmatprep.mubr.f32.mxu1 %v2935_v5 }
  0x3f   : > { %2499 = vmatmul.mubr.msk.f32.gmra.mrb[14].mxu0 %vm254_vm0, %v3179_v22 }
  0x40   : > { %2267 = vmatmul.mubr.msk.f32.gmra.mrb[14].mxu1 %vm254_vm0, %v3193_v31  ;;  %2501 = vmatprep.mubr.msk.f32.mxu0 %vm254_vm0, %v3193_v31 }
  0x41   : > { %421 = vmatprep.mubr.f32.mxu1 %v2935_v5 }
  0x43   : > { %2502 = vmatmul.mubr.msk.f32.gmra.mrb[16].mxu0 %vm254_vm0, %v3205_v33 }
  0x44   : > { %2268 = vmatmul.mubr.msk.f32.gmra.mrb[16].mxu1 %vm254_vm0, %v3205_v33  ;;  %790 = vmatprep.mubr.f32.mxu0 %v2935_v5 }
  0x45   : > { %492 = vmatprep.mubr.f32.mxu1 %v2935_v5 }
  0x47   : > { %2293 = vmatmul.mubr.msk.f32.vlgmr.msra.gmra.mrb[0].mxu0 %vm254_vm0, %v3061_v24 }
  0x48   : > { %2269 = vmatmul.mubr.msk.f32.vlgmr.msra.gmra.mrb[18].mxu1 %vm254_vm0, %v3095_v51  ;;  %2571 = vmatpush3.bf16.msra.mxu0 %v3042_v12 }
  0x49   : > { %2567 = vmatpush1.bf16.msra.mxu1 %v3097_v52  ;;  %498 = vmatprep.mubr.f32.mxu1 %v2935_v5 }
  0x4a   : > { %796 = vmatprep.mubr.f32.mxu0 %v2935_v5  ;;  %2573 = vmatprep.subr.bf16.mxu0 %v3017_v3 }
  0x4b   : > { %2294 = vmatmul.mubr.msk.f32.gmra.mrb[2].mxu0 %vm254_vm0, %v3063_v25  ;;  %2577 = vmatprep.subr.bf16.mxu1 %v3032_v9 }
  0x4c   : > { %2270 = vmatmul.mubr.msk.f32.gmra.mrb[20].mxu1 %vm254_vm0, %v3103_v56  ;;  %802 = vmatprep.mubr.f32.mxu0 %v2935_v5 }
  0x4d   : > { %504 = vmatprep.mubr.f32.mxu1 %v2935_v5 }
  0x4f   : > { %2295 = vmatmul.mubr.msk.f32.gmra.mrb[4].mxu0 %vm254_vm0, %v3065_v27 }
  0x50   : > { %2271 = vmatmul.mubr.msk.f32.gmra.mrb[22].mxu1 %vm254_vm0, %v3110_v59  ;;  %808 = vmatprep.mubr.f32.mxu0 %v2935_v5 }
  0x51   : > { %510 = vmatprep.mubr.f32.mxu1 %v2935_v5 }
  0x53   : > { %2296 = vmatmul.mubr.msk.f32.gmra.mrb[18].mxu0 %vm254_vm0, %v3067_v28 }
  0x54   : > { %2272 = vmatmul.mubr.msk.f32.gmra.mrb[24].mxu1 %vm254_vm0, %v3101_v55  ;;  %814 = vmatprep.mubr.f32.mxu0 %v2935_v5 }
  0x55   : > { %516 = vmatprep.mubr.f32.mxu1 %v2935_v5 }
  0x57   : > { %2297 = vmatmul.mubr.msk.f32.gmra.mrb[20].mxu0 %vm254_vm0, %v3069_v29 }
  0x58   : > { %2273 = vmatmul.mubr.msk.f32.gmra.mrb[26].mxu1 %vm254_vm0, %v3117_v61  ;;  %820 = vmatprep.mubr.f32.mxu0 %v2935_v5 }
  0x59   : > { %522 = vmatprep.mubr.f32.mxu1 %v2935_v5 }
  0x5b   : > { %2298 = vmatmul.mubr.msk.f32.gmra.mrb[22].mxu0 %vm254_vm0, %v3071_v30 }
  0x5c   : > { %2274 = vmatmul.mubr.msk.f32.gmra.mrb[28].mxu1 %vm254_vm0, %v3119_v62  ;;  %826 = vmatprep.mubr.f32.mxu0 %v2935_v5 }
  0x5d   : > { %528 = vmatprep.mubr.f32.mxu1 %v2935_v5 }
  0x5f   : > { %2299 = vmatmul.mubr.msk.f32.gmra.mrb[24].mxu0 %vm254_vm0, %v3077_v35 }
  0x60   : > { %2275 = vmatmul.mubr.msk.f32.gmra.mrb[30].mxu1 %vm254_vm0, %v3127_v1  ;;  %832 = vmatprep.mubr.f32.mxu0 %v2935_v5 }
  0x61   : > { %534 = vmatprep.mubr.f32.mxu1 %v2935_v5 }
  0x63   : > { %2300 = vmatmul.mubr.msk.f32.gmra.mrb[26].mxu0 %vm254_vm0, %v3079_v36 }
  0x64   : > { %2276 = vmatmul.mubr.msk.f32.gmra.mrb[32].mxu1 %vm254_vm0, %v3138_v7  ;;  %838 = vmatprep.mubr.f32.mxu0 %v2935_v5 }
  0x65   : > { %540 = vmatprep.mubr.f32.mxu1 %v2935_v5 }
  0x67   : > { %2301 = vmatmul.mubr.msk.f32.gmra.mrb[28].mxu0 %vm254_vm0, %v3099_v54 }
  0x68   : > { %2277 = vmatmul.mubr.msk.f32.gmra.mrb[34].mxu1 %vm254_vm0, %v3165_v18  ;;  %844 = vmatprep.mubr.f32.mxu0 %v2935_v5 }
  0x69   : > { %546 = vmatprep.mubr.f32.mxu1 %v2935_v5 }
  0x6b   : > { %2302 = vmatmul.mubr.msk.f32.gmra.mrb[30].mxu0 %vm254_vm0, %v3112_v60 }
  0x6c   : > { %2278 = vmatmul.mubr.msk.f32.gmra.mrb[36].mxu1 %vm254_vm0, %v3179_v22  ;;  %850 = vmatprep.mubr.f32.mxu0 %v2935_v5 }
  0x6d   : > { %552 = vmatprep.mubr.f32.mxu1 %v2935_v5 }
  0x6f   : > { %2303 = vmatmul.mubr.msk.f32.gmra.mrb[32].mxu0 %vm254_vm0, %v3140_v10 }
  0x70   : > { %2279 = vmatmul.mubr.msk.f32.gmra.mrb[38].mxu1 %vm254_vm0, %v3193_v31  ;;  %856 = vmatprep.mubr.f32.mxu0 %v2935_v5 }
  0x71   : > { %558 = vmatprep.mubr.f32.mxu1 %v2935_v5 }
  0x73   : > { %2304 = vmatmul.mubr.msk.f32.gmra.mrb[34].mxu0 %vm254_vm0, %v3147_v14 }
  0x74   : > { %2280 = vmatmul.mubr.msk.f32.gmra.mrb[40].mxu1 %vm254_vm0, %v3205_v33  ;;  %2508 = vmatprep.mubr.msk.f32.mxu0 %vm254_vm0, %v3061_v24 }
  0x75   : > { %927 = vmatprep.mubr.f32.mxu1 %v2935_v5 }
  0x77   : > { %2509 = vmatmul.mubr.msk.f32.vlgmr.msra.gmra.mrb[6].mxu0 %vm254_vm0, %v3063_v25 }
  0x78   : > { %2305 = vmatmul.mubr.msk.f32.vlgmr.msra.gmra.mrb[18].mxu1 %vm254_vm0, %v3061_v24  ;;  %2575 = vmatpush1.bf16.msra.mxu0 %v3030_v8 }
  0x79   : > { %2579 = vmatpush1.bf16.msra.mxu1 %v3097_v52  ;;  %933 = vmatprep.mubr.f32.mxu1 %v2935_v5 }
  0x7a   : > { %2511 = vmatprep.mubr.msk.f32.mxu0 %vm254_vm0, %v3065_v27  ;;  %2581 = vmatprep.subr.bf16.mxu0 %v3042_v12 }
  0x7b   : > { %2512 = vmatmul.mubr.msk.f32.gmra.mrb[8].mxu0 %vm254_vm0, %v3067_v28 }
  0x7c   : > { %2306 = vmatmul.mubr.msk.f32.gmra.mrb[20].mxu1 %vm254_vm0, %v3063_v25  ;;  %2514 = vmatprep.mubr.msk.f32.mxu0 %vm254_vm0, %v3069_v29 }
  0x7d   : > { %939 = vmatprep.mubr.f32.mxu1 %v2935_v5 }
  0x7f   : > { %2515 = vmatmul.mubr.msk.f32.gmra.mrb[10].mxu0 %vm254_vm0, %v3071_v30 }
  0x80   : > { %2307 = vmatmul.mubr.msk.f32.gmra.mrb[22].mxu1 %vm254_vm0, %v3065_v27  ;;  %2517 = vmatprep.mubr.msk.f32.mxu0 %vm254_vm0, %v3077_v35 }
  0x81   : > { %945 = vmatprep.mubr.f32.mxu1 %v2935_v5 }
  0x83   : > { %2518 = vmatmul.mubr.msk.f32.gmra.mrb[12].mxu0 %vm254_vm0, %v3079_v36 }
  0x84   : > { %2308 = vmatmul.mubr.msk.f32.gmra.mrb[24].mxu1 %vm254_vm0, %v3067_v28  ;;  %2520 = vmatprep.mubr.msk.f32.mxu0 %vm254_vm0, %v3099_v54 }
  0x85   : > { %951 = vmatprep.mubr.f32.mxu1 %v2935_v5 }
  0x87   : > { %2521 = vmatmul.mubr.msk.f32.gmra.mrb[14].mxu0 %vm254_vm0, %v3112_v60 }
  0x88   : > { %2309 = vmatmul.mubr.msk.f32.gmra.mrb[26].mxu1 %vm254_vm0, %v3069_v29  ;;  %2523 = vmatprep.mubr.msk.f32.mxu0 %vm254_vm0, %v3140_v10 }
  0x89   : > { %957 = vmatprep.mubr.f32.mxu1 %v2935_v5 }
  0x8b   : > { %2524 = vmatmul.mubr.msk.f32.gmra.mrb[16].mxu0 %vm254_vm0, %v3147_v14 }
  0x8c   : > { %2310 = vmatmul.mubr.msk.f32.gmra.mrb[28].mxu1 %vm254_vm0, %v3071_v30  ;;  %1225 = vmatprep.mubr.f32.mxu0 %v2935_v5 }
  0x8d   : > { %963 = vmatprep.mubr.f32.mxu1 %v2935_v5 }
  0x8f   : > { %2329 = vmatmul.mubr.msk.f32.vlgmr.msra.gmra.mrb[0].mxu0 %vm254_vm0, %v3106_v58 }
  0x90   : > { %2311 = vmatmul.mubr.msk.f32.gmra.mrb[30].mxu1 %vm254_vm0, %v3077_v35  ;;  %2583 = vmatpush3.bf16.msra.mxu0 %v3042_v12 }
  0x91   : > { %969 = vmatprep.mubr.f32.mxu1 %v2935_v5  ;;  %1231 = vmatprep.mubr.f32.mxu0 %v2935_v5 }
  0x93   : > { %2330 = vmatmul.mubr.msk.f32.gmra.mrb[2].mxu0 %vm254_vm0, %v3123_v0 }
  0x94   : > { %2312 = vmatmul.mubr.msk.f32.gmra.mrb[32].mxu1 %vm254_vm0, %v3079_v36  ;;  %1237 = vmatprep.mubr.f32.mxu0 %v2935_v5 }
  0x95   : > { %975 = vmatprep.mubr.f32.mxu1 %v2935_v5 }
  0x97   : > { %2331 = vmatmul.mubr.msk.f32.gmra.mrb[4].mxu0 %vm254_vm0, %v3131_v4 }
  0x98   : > { %2313 = vmatmul.mubr.msk.f32.gmra.mrb[34].mxu1 %vm254_vm0, %v3099_v54  ;;  %1243 = vmatprep.mubr.f32.mxu0 %v2935_v5 }
  0x99   : > { %981 = vmatprep.mubr.f32.mxu1 %v2935_v5 }
  0x9b   : > { %2332 = vmatmul.mubr.msk.f32.gmra.mrb[18].mxu0 %vm254_vm0, %v3134_v6 }
  0x9c   : > { %2314 = vmatmul.mubr.msk.f32.gmra.mrb[36].mxu1 %vm254_vm0, %v3112_v60  ;;  %1249 = vmatprep.mubr.f32.mxu0 %v2935_v5 }
  0x9d   : > { %987 = vmatprep.mubr.f32.mxu1 %v2935_v5 }
  0x9f   : > { %2333 = vmatmul.mubr.msk.f32.gmra.mrb[20].mxu0 %vm254_vm0, %v3143_v11 }
  0xa0   : > { %2315 = vmatmul.mubr.msk.f32.gmra.mrb[38].mxu1 %vm254_vm0, %v3140_v10  ;;  %1255 = vmatprep.mubr.f32.mxu0 %v2935_v5 }
  0xa1   : > { %993 = vmatprep.mubr.f32.mxu1 %v2935_v5 }
  0xa3   : > { %2334 = vmatmul.mubr.msk.f32.gmra.mrb[22].mxu0 %vm254_vm0, %v3151_v15 }
  0xa4   : > { %2316 = vmatmul.mubr.msk.f32.gmra.mrb[40].mxu1 %vm254_vm0, %v3147_v14  ;;  %1261 = vmatprep.mubr.f32.mxu0 %v2935_v5 }
  0xa5   : > { %1362 = vmatprep.mubr.f32.mxu1 %v2935_v5 }
  0xa7   : > { %2335 = vmatmul.mubr.msk.f32.gmra.mrb[24].mxu0 %vm254_vm0, %v3154_v16 }
  0xa8   : > { %2341 = vmatmul.mubr.msk.f32.vlgmr.msra.gmra.mrb[18].mxu1 %vm254_vm0, %v3106_v58  ;;  %1267 = vmatprep.mubr.f32.mxu0 %v2935_v5 }
  0xa9   : > { %1368 = vmatprep.mubr.f32.mxu1 %v2935_v5 }
  0xab   : > { %2336 = vmatmul.mubr.msk.f32.gmra.mrb[26].mxu0 %vm254_vm0, %v3161_v17 }
  0xac   : > { %2342 = vmatmul.mubr.msk.f32.gmra.mrb[20].mxu1 %vm254_vm0, %v3123_v0  ;;  %1273 = vmatprep.mubr.f32.mxu0 %v2935_v5 }
  0xad   : > { %1374 = vmatprep.mubr.f32.mxu1 %v2935_v5 }
  0xaf   : > { %2337 = vmatmul.mubr.msk.f32.gmra.mrb[28].mxu0 %vm254_vm0, %v3175_v21 }
  0xb0   : > { %2343 = vmatmul.mubr.msk.f32.gmra.mrb[22].mxu1 %vm254_vm0, %v3131_v4  ;;  %1279 = vmatprep.mubr.f32.mxu0 %v2935_v5 }
  0xb1   : > { %1380 = vmatprep.mubr.f32.mxu1 %v2935_v5 }
  0xb3   : > { %2338 = vmatmul.mubr.msk.f32.gmra.mrb[30].mxu0 %vm254_vm0, %v3188_v26 }
  0xb4   : > { %2344 = vmatmul.mubr.msk.f32.gmra.mrb[24].mxu1 %vm254_vm0, %v3134_v6  ;;  %1285 = vmatprep.mubr.f32.mxu0 %v2935_v5 }
  0xb5   : > { %1386 = vmatprep.mubr.f32.mxu1 %v2935_v5 }
  0xb7   : > { %2339 = vmatmul.mubr.msk.f32.gmra.mrb[32].mxu0 %vm254_vm0, %v3201_v32 }
  0xb8   : > { %2345 = vmatmul.mubr.msk.f32.gmra.mrb[26].mxu1 %vm254_vm0, %v3143_v11  ;;  %1291 = vmatprep.mubr.f32.mxu0 %v2935_v5 }
  0xb9   : > { %1392 = vmatprep.mubr.f32.mxu1 %v2935_v5 }
  0xbb   : > { %2340 = vmatmul.mubr.msk.f32.gmra.mrb[34].mxu0 %vm254_vm0, %v3213_v34 }
  0xbc   : > { %2346 = vmatmul.mubr.msk.f32.gmra.mrb[28].mxu1 %vm254_vm0, %v3151_v15  ;;  %2530 = vmatprep.mubr.msk.f32.mxu0 %vm254_vm0, %v3106_v58 }
  0xbd   : > { %1398 = vmatprep.mubr.f32.mxu1 %v2935_v5 }
  0xbf   : > { %2531 = vmatmul.mubr.msk.f32.vlgmr.msra.gmra.mrb[6].mxu0 %vm254_vm0, %v3123_v0 }
  0xc0   : > { %2347 = vmatmul.mubr.msk.f32.gmra.mrb[30].mxu1 %vm254_vm0, %v3154_v16  ;;  %2533 = vmatprep.mubr.msk.f32.mxu0 %vm254_vm0, %v3131_v4 }
  0xc1   : > { %1404 = vmatprep.mubr.f32.mxu1 %v2935_v5 }
  0xc3   : > { %2534 = vmatmul.mubr.msk.f32.gmra.mrb[8].mxu0 %vm254_vm0, %v3134_v6 }
  0xc4   : > { %2348 = vmatmul.mubr.msk.f32.gmra.mrb[32].mxu1 %vm254_vm0, %v3161_v17  ;;  %2536 = vmatprep.mubr.msk.f32.mxu0 %vm254_vm0, %v3143_v11 }
  0xc5   : > { %1410 = vmatprep.mubr.f32.mxu1 %v2935_v5 }
  0xc7   : > { %2537 = vmatmul.mubr.msk.f32.gmra.mrb[10].mxu0 %vm254_vm0, %v3151_v15 }
  0xc8   : > { %2349 = vmatmul.mubr.msk.f32.gmra.mrb[34].mxu1 %vm254_vm0, %v3175_v21  ;;  %2539 = vmatprep.mubr.msk.f32.mxu0 %vm254_vm0, %v3154_v16 }
  0xc9   : > { %1416 = vmatprep.mubr.f32.mxu1 %v2935_v5 }
  0xcb   : > { %2540 = vmatmul.mubr.msk.f32.gmra.mrb[12].mxu0 %vm254_vm0, %v3161_v17 }
  0xcc   : > { %2350 = vmatmul.mubr.msk.f32.gmra.mrb[36].mxu1 %vm254_vm0, %v3188_v26  ;;  %2542 = vmatprep.mubr.msk.f32.mxu0 %vm254_vm0, %v3175_v21 }
  0xcd   : > { %1422 = vmatprep.mubr.f32.mxu1 %v2935_v5 }
  0xcf   : > { %2543 = vmatmul.mubr.msk.f32.gmra.mrb[14].mxu0 %vm254_vm0, %v3188_v26 }
  0xd0   : > { %2351 = vmatmul.mubr.msk.f32.gmra.mrb[38].mxu1 %vm254_vm0, %v3201_v32  ;;  %2545 = vmatprep.mubr.msk.f32.mxu0 %vm254_vm0, %v3201_v32 }
  0xd1   : > { %1428 = vmatprep.mubr.f32.mxu1 %v2935_v5 }
  0xd3   : > { %2546 = vmatmul.mubr.msk.f32.gmra.mrb[16].mxu0 %vm254_vm0, %v3213_v34 }
  0xd4   : > { %2352 = vmatmul.mubr.msk.f32.gmra.mrb[40].mxu1 %vm254_vm0, %v3213_v34 }
  0xf7   : > { %v375_v3 = vpop.f32.mrb[0].mxu1 }
  0xf8   : > { %v377_v8 = vpop.f32.mrb[1].mxu1 }
  0xfb   : > { %v3469_v9 = vpop.f32.mrb[2].mxu1 }
  0xfc   : > { %v3471_v12 = vpop.f32.mrb[3].mxu1 }
  0xff   : > { %v3473_v24 = vpop.f32.mrb[4].mxu1 }
 0x100   : > { %v3475_v25 = vpop.f32.mrb[5].mxu1 }
 0x103   : > { %v3477_v27 = vpop.f32.mrb[6].mxu1 }
 0x104   : > { %v3479_v28 = vpop.f32.mrb[7].mxu1 }
 0x107   : > { %v3481_v5 = vpop.f32.mrb[8].mxu1 }
 0x108   : > { %v3483_v29 = vpop.f32.mrb[9].mxu1 }
 0x10b   : > { %v3485_v30 = vpop.f32.mrb[10].mxu1 }
 0x10c   : > { %v3487_v35 = vpop.f32.mrb[11].mxu1 }
 0x10f   : > { %v3489_v36 = vpop.f32.mrb[12].mxu1 }
 0x110   : > { %v3491_v37 = vpop.f32.mrb[13].mxu1 }
 0x113   : > { %v3493_v38 = vpop.f32.mrb[14].mxu1 }
 0x114   : > { %v3495_v39 = vpop.f32.mrb[15].mxu1 }
 0x117   : > { %v3497_v40 = vpop.f32.mrb[16].mxu1 }
 0x118   : > { %v3499_v41 = vpop.f32.mrb[17].mxu1 }
 0x162   : > { %v1227_v49 = vpop.f32.mrb[0].mxu0 }
 0x163   : > { %v1647_v50 = vsub.f32 %v1227_v49, %v3511_v47  ;;  %v1229_v51 = vpop.f32.mrb[1].mxu0 }
 0x164   : > { %v1648_v52 = vsub.f32 %v1229_v51, %v3514_v48  ;;  %v1636_v51 = vsub.s32 3, %v3501_v43 }
 0x165   : > { %v1707_v53 = vmul.f32 -4.875, %v1647_v50 }
 0x166   : > { %v1708_v54 = vmul.f32 -4.875, %v1648_v52  ;;  %v1233_v55 = vpop.f32.mrb[2].mxu0 }
 0x167   : > { %v1767_v56 = vmul.f32 %v1707_v53, %v1647_v50  ;;  %v1652_v57 = vsub.f32 %v1233_v55, %v3511_v47  ;;  %v1235_v58 = vpop.f32.mrb[3].mxu0 }
 0x168   : > { %v1768_v59 = vmul.f32 %v1708_v54, %v1648_v52  ;;  %v1653_v60 = vsub.f32 %v1235_v58, %v3514_v48 }
 0x169   : > { %v1827_v61 = vmul.f32 1.442695, %v1767_v56  ;;  %v1712_v62 = vmul.f32 -4.875, %v1652_v57 }
 0x16a   : > { %v1829_v63 = vmul.f32 1.442695, %v1768_v59  ;;  %v1713_v0 = vmul.f32 -4.875, %v1653_v60  ;;  %v1239_v1 = vpop.f32.mrb[4].mxu0 }
 0x16b   : > { %2751 = vpow2.f32 %v1827_v61  ;;  %v1772_v2 = vmul.f32 %v1712_v62, %v1652_v57  ;;  %v1657_v4 = vsub.f32 %v1239_v1, %v3511_v47  ;;  %v1241_v6 = vpop.f32.mrb[5].mxu0 }
 0x16c   : > { %2753 = vpow2.f32 %v1829_v63  ;;  %v1773_v7 = vmul.f32 %v1713_v0, %v1653_v60  ;;  %v1658_v10 = vsub.f32 %v1241_v6, %v3514_v48 }
 0x16d   : > { %v1837_v11 = vmul.f32 1.442695, %v1772_v2  ;;  %v1717_v13 = vmul.f32 -4.875, %v1657_v4  ;;  %v3547_v2 = vrot.slane %v3507_v45, %v1636_v51 }
 0x16e   : > { %v1839_v14 = vmul.f32 1.442695, %v1773_v7  ;;  %v1718_v15 = vmul.f32 -4.875, %v1658_v10  ;;  %v1245_v16 = vpop.f32.mrb[18].mxu0 }
 0x16f   : > { %2755 = vpow2.f32 %v1837_v11  ;;  %v1777_v17 = vmul.f32 %v1717_v13, %v1657_v4  ;;  %v2586_v18 = vadd.f32 %v1245_v16, %v375_v3  ;;  %v1247_v19 = vpop.f32.mrb[19].mxu0 }
 0x170   : > { %2757 = vpow2.f32 %v1839_v14  ;;  %v1778_v20 = vmul.f32 %v1718_v15, %v1658_v10  ;;  %v2587_v21 = vadd.f32 %v1247_v19, %v377_v8  ;;  %v1632_v8 = vsub.s32 2, %v3501_v43 }
 0x171   : > { %v1847_v22 = vmul.f32 1.442695, %v1777_v17  ;;  %v1662_v23 = vsub.f32 %v2586_v18, %v3511_v47 }
 0x172   : > { %v1849_v26 = vmul.f32 1.442695, %v1778_v20  ;;  %v1663_v31 = vsub.f32 %v2587_v21, %v3514_v48  ;;  %v1251_v32 = vpop.f32.mrb[20].mxu0  ;;  %v3539_v63 = vrot.slane %v3507_v45, %v1632_v8 }
 0x173   : > { %2759 = vpow2.f32 %v1847_v22  ;;  %v1722_v33 = vmul.f32 -4.875, %v1662_v23  ;;  %v2588_v34 = vadd.f32 %v1251_v32, %v3469_v9  ;;  %v1253_v42 = vpop.f32.mrb[21].mxu0  ;;  %v1640_v9 = vsub.s32 4, %v3501_v43 }
 0x174   : > { %2761 = vpow2.f32 %v1849_v26  ;;  %v1723_v3 = vmul.f32 -4.875, %v1663_v31  ;;  %v2589_v44 = vadd.f32 %v1253_v42, %v3471_v12 }
 0x175   : > { %v2752_v46 = vpop.eup %2751  ;;  %v1782_v49 = vmul.f32 %v1722_v33, %v1662_v23  ;;  %v1667_v50 = vsub.f32 %v2588_v34, %v3511_v47  ;;  %v3551_v7 = vrot.slane %v3507_v45, %v1640_v9 }
 0x176   : > { %v2754_v52 = vpop.eup %2753  ;;  %v1783_v53 = vmul.f32 %v1723_v3, %v1663_v31  ;;  %v1668_v54 = vsub.f32 %v2589_v44, %v3514_v48  ;;  %v1257_v55 = vpop.f32.mrb[22].mxu0 }
 0x177   : > { %v2404_v56 = vpack.c.bf16 %v2754_v52, %v2752_v46  ;;  %v1857_v57 = vmul.f32 1.442695, %v1782_v49  ;;  %v1727_v58 = vmul.f32 -4.875, %v1667_v50  ;;  %v2590_v12 = vadd.f32 %v1257_v55, %v3473_v24  ;;  %v1259_v59 = vpop.f32.mrb[23].mxu0 }
 0x178   : > { %v1859_v60 = vmul.f32 1.442695, %v1783_v53  ;;  %v1728_v61 = vmul.f32 -4.875, %v1668_v54  ;;  %v2591_v62 = vadd.f32 %v1259_v59, %v3475_v25 }
 0x179   : > { %v2756_v0 = vpop.eup %2755  ;;  %2139 = vst [vmem:[%s3542_s8] sm:$0xff] %v2404_v56  ;;  %2763 = vpow2.f32 %v1857_v57  ;;  %v1787_v43 = vmul.f32 %v1727_v58, %v1667_v50  ;;  %v1672_v1 = vsub.f32 %v2590_v12, %v3511_v47 }
 0x17a   : > { %v2758_v24 = vpop.eup %2757  ;;  %2765 = vpow2.f32 %v1859_v60  ;;  %v1788_v4 = vmul.f32 %v1728_v61, %v1668_v54  ;;  %v1673_v25 = vsub.f32 %v2591_v62, %v3514_v48  ;;  %v1263_v6 = vpop.f32.mrb[24].mxu0 }
 0x17b   : > { %v2407_v10 = vpack.c.bf16 %v2758_v24, %v2756_v0  ;;  %v1867_v11 = vmul.f32 1.442695, %v1787_v43  ;;  %v1732_v13 = vmul.f32 -4.875, %v1672_v1  ;;  %v2592_v14 = vadd.f32 %v1263_v6, %v3477_v27  ;;  %v1364_v15 = vpop.f32.mrb[18].mxu1  ;;  %v1265_v16 = vpop.f32.mrb[25].mxu0 }
 0x17c   : > { %v1869_v17 = vmul.f32 1.442695, %v1788_v4  ;;  %v1733_v18 = vmul.f32 -4.875, %v1673_v25  ;;  %v1649_v19 = vsub.f32 %v1364_v15, %v3539_v63  ;;  %v2593_v20 = vadd.f32 %v1265_v16, %v3479_v28  ;;  %v1366_v21 = vpop.f32.mrb[19].mxu1 }
 0x17d   : > { %v2760_v22 = vpop.eup %2759  ;;  %2142 = vst [vmem:[%s3542_s8 + $0x14] sm:$0xff] %v2407_v10  ;;  %2767 = vpow2.f32 %v1867_v11  ;;  %v1792_v23 = vmul.f32 %v1732_v13, %v1672_v1  ;;  %v1677_v45 = vsub.f32 %v2592_v14, %v3511_v47  ;;  %v1650_v26 = vsub.f32 %v1366_v21, %v3547_v2 }
 0x17e   : > { %v2762_v31 = vpop.eup %2761  ;;  %2769 = vpow2.f32 %v1869_v17  ;;  %v1793_v27 = vmul.f32 %v1733_v18, %v1673_v25  ;;  %v1709_v32 = vmul.f32 -4.875, %v1649_v19  ;;  %v1678_v33 = vsub.f32 %v2593_v20, %v3514_v48  ;;  %v1269_v34 = vpop.f32.mrb[26].mxu0 }
 0x17f   : > { %v2410_v42 = vpack.c.bf16 %v2762_v31, %v2760_v22  ;;  %v1877_v3 = vmul.f32 1.442695, %v1792_v23  ;;  %v1737_v28 = vmul.f32 -4.875, %v1677_v45  ;;  %v1710_v44 = vmul.f32 -4.875, %v1650_v26  ;;  %v1370_v8 = vpop.f32.mrb[20].mxu1  ;;  %v1271_v46 = vpop.f32.mrb[27].mxu0 }
 0x180   : > { %v1879_v49 = vmul.f32 1.442695, %v1793_v27  ;;  %v1769_v50 = vmul.f32 %v1709_v32, %v1649_v19  ;;  %v1738_v51 = vmul.f32 -4.875, %v1678_v33  ;;  %v2594_v52 = vadd.f32 %v1269_v34, %v3481_v5  ;;  %v1372_v53 = vpop.f32.mrb[21].mxu1 }
 0x181   : > { %2145 = vst [vmem:[%s3542_s8 + $0x28] sm:$0xff] %v2410_v42  ;;  %2771 = vpow2.f32 %v1877_v3  ;;  %v1797_v54 = vmul.f32 %v1737_v28, %v1677_v45  ;;  %v1770_v55 = vmul.f32 %v1710_v44, %v1650_v26  ;;  %v1654_v9 = vsub.f32 %v1370_v8, %v3539_v63 }
 0x182   : > { %2773 = vpow2.f32 %v1879_v49  ;;  %v1831_v56 = vmul.f32 1.442695, %v1769_v50  ;;  %v1798_v57 = vmul.f32 %v1738_v51, %v1678_v33  ;;  %v1682_v58 = vsub.f32 %v2594_v52, %v3511_v47  ;;  %v1275_v12 = vpop.f32.mrb[28].mxu0 }
 0x183   : > { %v2764_v59 = vpop.eup %2763  ;;  %v1887_v60 = vmul.f32 1.442695, %v1797_v54  ;;  %v1833_v61 = vmul.f32 1.442695, %v1770_v55  ;;  %v1714_v62 = vmul.f32 -4.875, %v1654_v9  ;;  %v2595_v0 = vadd.f32 %v1271_v46, %v3483_v29  ;;  %v1376_v5 = vpop.f32.mrb[22].mxu1 }
 0x184   : > { %v2766_v43 = vpop.eup %2765  ;;  %2775 = vpow2.f32 %v1831_v56  ;;  %v1889_v1 = vmul.f32 1.442695, %v1798_v57  ;;  %v1742_v24 = vmul.f32 -4.875, %v1682_v58  ;;  %v1655_v4 = vsub.f32 %v1372_v53, %v3547_v2  ;;  %v1277_v25 = vpop.f32.mrb[29].mxu0 }
 0x185   : > { %v1378_v6 = vpop.f32.mrb[23].mxu1  ;;  %v2413_v10 = vpack.c.bf16 %v2766_v43, %v2764_v59  ;;  %2777 = vpow2.f32 %v1887_v60  ;;  %v1774_v11 = vmul.f32 %v1714_v62, %v1654_v9  ;;  %v1683_v13 = vsub.f32 %v2595_v0, %v3514_v48 }
 0x186   : > { %2779 = vpow2.f32 %v1889_v1  ;;  %v1802_v14 = vmul.f32 %v1742_v24, %v1682_v58  ;;  %v1715_v15 = vmul.f32 -4.875, %v1655_v4  ;;  %v2596_v29 = vadd.f32 %v1275_v12, %v3485_v30  ;;  %v1281_v16 = vpop.f32.mrb[30].mxu0 }
 0x187   : > { %v2768_v17 = vpop.eup %2767  ;;  %2148 = vst [vmem:[%s3542_s8 + $0x3c] sm:$0xff] %v2413_v10  ;;  %2781 = vpow2.f32 %v1833_v61  ;;  %v1841_v18 = vmul.f32 1.442695, %v1774_v11  ;;  %v1743_v19 = vmul.f32 -4.875, %v1683_v13  ;;  %v1659_v20 = vsub.f32 %v1376_v5, %v3539_v63  ;;  %v1382_v21 = vpop.f32.mrb[24].mxu1 }
 0x188   : > { %v1283_v22 = vpop.f32.mrb[31].mxu0  ;;  %v2770_v23 = vpop.eup %2769  ;;  %v1897_v45 = vmul.f32 1.442695, %v1802_v14  ;;  %v1775_v26 = vmul.f32 %v1715_v15, %v1655_v4  ;;  %v1687_v31 = vsub.f32 %v2596_v29, %v3511_v47  ;;  %v2597_v27 = vadd.f32 %v1277_v25, %v3487_v35 }
 0x189   : > { %v1384_v32 = vpop.f32.mrb[25].mxu1  ;;  %v2416_v30 = vpack.c.bf16 %v2770_v23, %v2768_v17  ;;  %2783 = vpow2.f32 %v1841_v18  ;;  %v1803_v33 = vmul.f32 %v1743_v19, %v1683_v13  ;;  %v1719_v34 = vmul.f32 -4.875, %v1659_v20 }
 0x18a   : > { %2785 = vpow2.f32 %v1897_v45  ;;  %v1843_v42 = vmul.f32 1.442695, %v1775_v26  ;;  %v1747_v3 = vmul.f32 -4.875, %v1687_v31  ;;  %v1688_v28 = vsub.f32 %v2597_v27, %v3514_v48  ;;  %v1287_v44 = vpop.f32.mrb[32].mxu0 }
 0x18b   : > { %v2772_v8 = vpop.eup %2771  ;;  %2151 = vst [vmem:[%s3542_s8 + $0x50] sm:$0xff] %v2416_v30  ;;  %v1899_v46 = vmul.f32 1.442695, %v1803_v33  ;;  %v1779_v49 = vmul.f32 %v1719_v34, %v1659_v20  ;;  %v1660_v50 = vsub.f32 %v1378_v6, %v3547_v2  ;;  %v2598_v51 = vadd.f32 %v1281_v16, %v3489_v36  ;;  %v1388_v35 = vpop.f32.mrb[26].mxu1 }
 0x18c   : > { %v1289_v52 = vpop.f32.mrb[33].mxu0  ;;  %v2774_v53 = vpop.eup %2773  ;;  %2787 = vpow2.f32 %v1843_v42  ;;  %v1807_v54 = vmul.f32 %v1747_v3, %v1687_v31  ;;  %v1748_v55 = vmul.f32 -4.875, %v1688_v28  ;;  %v1664_v9 = vsub.f32 %v1382_v21, %v3539_v63 }
 0x18d   : > { %v1390_v56 = vpop.f32.mrb[27].mxu1  ;;  %v2419_v57 = vpack.c.bf16 %v2774_v53, %v2772_v8  ;;  %2789 = vpow2.f32 %v1899_v46  ;;  %v1851_v58 = vmul.f32 1.442695, %v1779_v49  ;;  %v1720_v12 = vmul.f32 -4.875, %v1660_v50 }
 0x18e   : > { %v2776_v59 = vpop.eup %2775  ;;  %v1907_v60 = vmul.f32 1.442695, %v1807_v54  ;;  %v1808_v61 = vmul.f32 %v1748_v55, %v1688_v28  ;;  %v1692_v62 = vsub.f32 %v2598_v51, %v3511_v47  ;;  %v1724_v36 = vmul.f32 -4.875, %v1664_v9  ;;  %v1293_v0 = vpop.f32.mrb[34].mxu0 }
 0x18f   : > { %v2778_v5 = vpop.eup %2777  ;;  %2154 = vst [vmem:[%s3542_s8 + $0x64] sm:$0xff] %v2419_v57  ;;  %2791 = vpow2.f32 %v1851_v58  ;;  %v1780_v43 = vmul.f32 %v1720_v12, %v1660_v50  ;;  %v2599_v1 = vadd.f32 %v1283_v22, %v3491_v37  ;;  %v1665_v24 = vsub.f32 %v1384_v32, %v3547_v2  ;;  %v1394_v4 = vpop.f32.mrb[28].mxu1 }
 0x190   : > { %v3581_v25 = vpop.f32.mrb[35].mxu0  ;;  %v2780_v6 = vpop.eup %2779  ;;  %2793 = vpow2.f32 %v1907_v60  ;;  %v1909_v10 = vmul.f32 1.442695, %v1808_v61  ;;  %v1752_v11 = vmul.f32 -4.875, %v1692_v62  ;;  %v1784_v13 = vmul.f32 %v1724_v36, %v1664_v9 }
 0x191   : > { %v3583_v14 = vpop.f32.mrb[29].mxu1  ;;  %v2782_v15 = vpop.eup %2781  ;;  %v2422_v29 = vpack.c.bf16 %v2780_v6, %v2778_v5  ;;  %v1853_v16 = vmul.f32 1.442695, %v1780_v43  ;;  %v1693_v17 = vsub.f32 %v2599_v1, %v3514_v48  ;;  %v1725_v37 = vmul.f32 -4.875, %v1665_v24 }
 0x192   : > { %v2405_v18 = vpack.c.bf16 %v2782_v15, %v2776_v59  ;;  %2795 = vpow2.f32 %v1909_v10  ;;  %v1812_v19 = vmul.f32 %v1752_v11, %v1692_v62  ;;  %v1861_v20 = vmul.f32 1.442695, %v1784_v13  ;;  %v3586_v21 = vpop.f32.mrb[6].mxu0 }
 0x193   : > { %v2784_v22 = vpop.eup %2783  ;;  %2157 = vst [vmem:[%s3542_s8 + $0x78] sm:$0xff] %v2422_v29  ;;  %2797 = vpow2.f32 %v1853_v16  ;;  %v1753_v23 = vmul.f32 -4.875, %v1693_v17  ;;  %v1785_v45 = vmul.f32 %v1725_v37, %v1665_v24  ;;  %v2600_v26 = vadd.f32 %v1287_v44, %v3493_v38  ;;  %v3590_v31 = vpop.f32.mrb[30].mxu1 }
 0x194   : > { %v3592_v27 = vpop.f32.mrb[7].mxu0  ;;  %v2786_v32 = vpop.eup %2785  ;;  %2140 = vst [vmem:[%s3542_s8 + $0x8] sm:$0xff] %v2405_v18  ;;  %v1917_v30 = vmul.f32 1.442695, %v1812_v19  ;;  %2799 = vpow2.f32 %v1861_v20  ;;  %v1669_v33 = vsub.f32 %v1388_v35, %v3539_v63  ;;  %v2601_v34 = vadd.f32 %v1289_v52, %v3495_v39 }
 0x195   : > { %v3597_v42 = vpop.f32.mrb[31].mxu1  ;;  %v1813_v3 = vmul.f32 %v1753_v23, %v1693_v17  ;;  %v1863_v28 = vmul.f32 1.442695, %v1785_v45  ;;  %v1697_v8 = vsub.f32 %v2600_v26, %v3511_v47  ;;  %v1670_v38 = vsub.f32 %v1390_v56, %v3547_v2 }
 0x196   : > { %v2788_v44 = vpop.eup %2787  ;;  %2801 = vpow2.f32 %v1917_v30  ;;  %v1729_v46 = vmul.f32 -4.875, %v1669_v33  ;;  %v1698_v49 = vsub.f32 %v2601_v34, %v3514_v48  ;;  %v2602_v50 = vadd.f32 %v1293_v0, %v3497_v40  ;;  %v3603_v51 = vpop.f32.mrb[8].mxu0 }
 0x197   : > { %v2790_v35 = vpop.eup %2789  ;;  %v2408_v39 = vpack.c.bf16 %v2788_v44, %v2784_v22  ;;  %v1919_v52 = vmul.f32 1.442695, %v1813_v3  ;;  %2803 = vpow2.f32 %v1863_v28  ;;  %v1757_v53 = vmul.f32 -4.875, %v1697_v8  ;;  %v1406_v54 = vpop.f32.mrb[32].mxu1 }
 0x198   : > { %v3605_v55 = vpop.f32.mrb[9].mxu0  ;;  %v2425_v9 = vpack.c.bf16 %v2790_v35, %v2786_v32  ;;  %v1789_v56 = vmul.f32 %v1729_v46, %v1669_v33  ;;  %v1758_v57 = vmul.f32 -4.875, %v1698_v49  ;;  %v1730_v58 = vmul.f32 -4.875, %v1670_v38  ;;  %v3607_v12 = vpop.f32.mrb[33].mxu1 }
 0x199   : > { %v2792_v59 = vpop.eup %2791  ;;  %2143 = vst [vmem:[%s3542_s8 + $0x1c] sm:$0xff] %v2408_v39  ;;  %2805 = vpow2.f32 %v1919_v52  ;;  %v1817_v40 = vmul.f32 %v1757_v53, %v1697_v8  ;;  %v1702_v60 = vsub.f32 %v2602_v50, %v3511_v47  ;;  %v1674_v61 = vsub.f32 %v1394_v4, %v3539_v63 }
 0x19a   : > { %v2794_v62 = vpop.eup %2793  ;;  %2160 = vst [vmem:[%s3542_s8 + $0x8c] sm:$0xff] %v2425_v9  ;;  %v1871_v36 = vmul.f32 1.442695, %v1789_v56  ;;  %v1818_v0 = vmul.f32 %v1758_v57, %v1698_v49  ;;  %v1790_v5 = vmul.f32 %v1730_v58, %v1670_v38  ;;  %v2603_v43 = vadd.f32 %v3581_v25, %v3499_v41  ;;  %v3615_v1 = vpop.f32.mrb[10].mxu0 }
 0x19b   : > { %v1927_v24 = vmul.f32 1.442695, %v1817_v40  ;;  %v1762_v6 = vmul.f32 -4.875, %v1702_v60  ;;  %v1734_v10 = vmul.f32 -4.875, %v1674_v61  ;;  %v1675_v11 = vsub.f32 %v3583_v14, %v3547_v2  ;;  %v3619_v13 = vpop.f32.mrb[34].mxu1  ;;  %v3621_v47 = vpop.f32.mrb[11].mxu0 }
 0x19c   : > { %v2796_v4 = vpop.eup %2795  ;;  %2807 = vpow2.f32 %v1871_v36  ;;  %v1929_v15 = vmul.f32 1.442695, %v1818_v0  ;;  %v1873_v29 = vmul.f32 1.442695, %v1790_v5  ;;  %v1703_v16 = vsub.f32 %v2603_v43, %v3514_v48  ;;  %v3624_v41 = vpop.f32.mrb[35].mxu1 }
 0x19d   : > { %v2798_v25 = vpop.eup %2797  ;;  %v2428_v17 = vpack.c.bf16 %v2796_v4, %v2794_v62  ;;  %2809 = vpow2.f32 %v1927_v24  ;;  %v1822_v37 = vmul.f32 %v1762_v6, %v1702_v60  ;;  %v1794_v18 = vmul.f32 %v1734_v10, %v1674_v61 }
 0x19e   : > { %v2800_v14 = vpop.eup %2799  ;;  %v2411_v19 = vpack.c.bf16 %v2798_v25, %v2792_v59  ;;  %2811 = vpow2.f32 %v1929_v15  ;;  %v1763_v20 = vmul.f32 -4.875, %v1703_v16  ;;  %v1735_v22 = vmul.f32 -4.875, %v1675_v11  ;;  %v3626_v23 = vpop.f32.mrb[12].mxu0 }
 0x19f   : > { %2163 = vst [vmem:[%s3542_s8 + $0xa0] sm:$0xff] %v2428_v17  ;;  %2813 = vpow2.f32 %v1873_v29  ;;  %v1937_v45 = vmul.f32 1.442695, %v1822_v37  ;;  %v1881_v26 = vmul.f32 1.442695, %v1794_v18  ;;  %v1679_v48 = vsub.f32 %v3590_v31, %v3539_v63  ;;  %v3631_v32 = vpop.f32.mrb[36].mxu1 }
 0x1a0   : > { %v3633_v30 = vpop.f32.mrb[13].mxu0  ;;  %v2802_v33 = vpop.eup %2801  ;;  %2146 = vst [vmem:[%s3542_s8 + $0x30] sm:$0xff] %v2411_v19  ;;  %v1823_v34 = vmul.f32 %v1763_v20, %v1703_v16  ;;  %v1795_v3 = vmul.f32 %v1735_v22, %v1675_v11  ;;  %v1656_v28 = vsub.f32 %v3586_v21, %v3551_v7  ;;  %v1680_v8 = vsub.f32 %v3597_v42, %v3547_v2 }
 0x1a1   : > { %v3640_v38 = vpop.f32.mrb[37].mxu1  ;;  %v2804_v44 = vpop.eup %2803  ;;  %2815 = vpow2.f32 %v1937_v45  ;;  %v1739_v46 = vmul.f32 -4.875, %v1679_v48  ;;  %v1651_v31 = vsub.f32 %v3592_v27, %v3551_v7  ;;  %v1684_v49 = vsub.f32 %v1406_v54, %v3539_v63 }
 0x1a2   : > { %v2414_v50 = vpack.c.bf16 %v2804_v44, %v2800_v14  ;;  %2817 = vpow2.f32 %v1881_v26  ;;  %v1939_v35 = vmul.f32 1.442695, %v1823_v34  ;;  %v1883_v39 = vmul.f32 1.442695, %v1795_v3  ;;  %v3645_v52 = vpop.f32.mrb[14].mxu0 }
 0x1a3   : > { %v2806_v21 = vpop.eup %2805  ;;  %v1799_v53 = vmul.f32 %v1739_v46, %v1679_v48  ;;  %v1716_v42 = vmul.f32 -4.875, %v1656_v28  ;;  %v1740_v9 = vmul.f32 -4.875, %v1680_v8  ;;  %v1711_v56 = vmul.f32 -4.875, %v1651_v31  ;;  %v3647_v57 = vpop.f32.mrb[38].mxu1 }
 0x1a4   : > { %v3649_v58 = vpop.f32.mrb[15].mxu0  ;;  %v2431_v59 = vpack.c.bf16 %v2806_v21, %v2802_v33  ;;  %2149 = vst [vmem:[%s3542_s8 + $0x44] sm:$0xff] %v2414_v50  ;;  %2819 = vpow2.f32 %v1939_v35  ;;  %v1744_v27 = vmul.f32 -4.875, %v1684_v49  ;;  %v1666_v54 = vsub.f32 %v3603_v51, %v3551_v7  ;;  %v3654_v40 = vpop.f32.mrb[39].mxu1 }
 0x1a5   : > { %2821 = vpow2.f32 %v1883_v39  ;;  %v1891_v60 = vmul.f32 1.442695, %v1799_v53  ;;  %v1776_v61 = vmul.f32 %v1716_v42, %v1656_v28  ;;  %v1800_v62 = vmul.f32 %v1740_v9, %v1680_v8 }
 0x1a6   : > { %v2808_v36 = vpop.eup %2807  ;;  %2166 = vst [vmem:[%s3542_s8 + $0xb4] sm:$0xff] %v2431_v59  ;;  %v1771_v0 = vmul.f32 %v1711_v56, %v1651_v31  ;;  %v1804_v5 = vmul.f32 %v1744_v27, %v1684_v49  ;;  %v1726_v43 = vmul.f32 -4.875, %v1666_v54  ;;  %v1685_v24 = vsub.f32 %v3607_v12, %v3547_v2  ;;  %v3659_v6 = vpop.f32.mrb[16].mxu0 }
 0x1a7   : > { %v2810_v10 = vpop.eup %2809  ;;  %2823 = vpow2.f32 %v1891_v60  ;;  %v1845_v11 = vmul.f32 1.442695, %v1776_v61  ;;  %v1893_v51 = vmul.f32 1.442695, %v1800_v62  ;;  %v1661_v4 = vsub.f32 %v3605_v55, %v3551_v7  ;;  %v3663_v15 = vpop.f32.mrb[40].mxu1 }
 0x1a8   : > { %v3665_v29 = vpop.f32.mrb[17].mxu0  ;;  %v2812_v16 = vpop.eup %2811  ;;  %v1835_v25 = vmul.f32 1.442695, %v1771_v0  ;;  %v1901_v17 = vmul.f32 1.442695, %v1804_v5  ;;  %v1786_v37 = vmul.f32 %v1726_v43, %v1666_v54  ;;  %v1745_v18 = vmul.f32 -4.875, %v1685_v24 }
 0x1a9   : > { %v3667_v12 = vpop.f32.mrb[41].mxu1  ;;  %v2814_v14 = vpop.eup %2813  ;;  %v2434_v19 = vpack.c.bf16 %v2812_v16, %v2810_v10  ;;  %2825 = vpow2.f32 %v1845_v11  ;;  %v1721_v20 = vmul.f32 -4.875, %v1661_v4  ;;  %v1689_v55 = vsub.f32 %v3619_v13, %v3539_v63 }
 0x1aa   : > { %v2417_v22 = vpack.c.bf16 %v2814_v14, %v2808_v36  ;;  %2827 = vpow2.f32 %v1893_v51  ;;  %v1865_v45 = vmul.f32 1.442695, %v1786_v37  ;;  %v1805_v26 = vmul.f32 %v1745_v18, %v1685_v24 }
 0x1ab   : > { %v2816_v48 = vpop.eup %2815  ;;  %2169 = vst [vmem:[%s3542_s8 + $0xc8] sm:$0xff] %v2434_v19  ;;  %2829 = vpow2.f32 %v1835_v25  ;;  %v1781_v33 = vmul.f32 %v1721_v20, %v1661_v4  ;;  %v1749_v34 = vmul.f32 -4.875, %v1689_v55  ;;  %v1676_v3 = vsub.f32 %v3615_v1, %v3551_v7 }
 0x1ac   : > { %v2818_v28 = vpop.eup %2817  ;;  %2152 = vst [vmem:[%s3542_s8 + $0x58] sm:$0xff] %v2417_v22  ;;  %2831 = vpow2.f32 %v1901_v17  ;;  %v1903_v8 = vmul.f32 1.442695, %v1805_v26  ;;  %v1690_v44 = vsub.f32 %v3624_v41, %v3547_v2  ;;  %v1671_v13 = vsub.f32 %v3621_v47, %v3551_v7 }
 0x1ad   : > { %2833 = vpow2.f32 %v1865_v45  ;;  %v1855_v46 = vmul.f32 1.442695, %v1781_v33  ;;  %v1809_v31 = vmul.f32 %v1749_v34, %v1689_v55  ;;  %v1736_v49 = vmul.f32 -4.875, %v1676_v3 }
 0x1ae   : > { %v2820_v50 = vpop.eup %2819  ;;  %2835 = vpow2.f32 %v1903_v8  ;;  %v1750_v35 = vmul.f32 -4.875, %v1690_v44  ;;  %v1731_v39 = vmul.f32 -4.875, %v1671_v13  ;;  %v1694_v1 = vsub.f32 %v3631_v32, %v3539_v63 }
 0x1af   : > { %v2822_v21 = vpop.eup %2821  ;;  %v2437_v53 = vpack.c.bf16 %v2820_v50, %v2816_v48  ;;  %2837 = vpow2.f32 %v1855_v46  ;;  %v1911_v41 = vmul.f32 1.442695, %v1809_v31  ;;  %v1796_v42 = vmul.f32 %v1736_v49, %v1676_v3 }
 0x1b0   : > { %v2420_v9 = vpack.c.bf16 %v2822_v21, %v2818_v28  ;;  %v1810_v47 = vmul.f32 %v1750_v35, %v1690_v44  ;;  %v1791_v56 = vmul.f32 %v1731_v39, %v1671_v13  ;;  %v1754_v59 = vmul.f32 -4.875, %v1694_v1 }
 0x1b1   : > { %v2824_v27 = vpop.eup %2823  ;;  %2172 = vst [vmem:[%s3542_s8 + $0xdc] sm:$0xff] %v2437_v53  ;;  %2839 = vpow2.f32 %v1911_v41  ;;  %v1885_v54 = vmul.f32 1.442695, %v1796_v42  ;;  %v1686_v60 = vsub.f32 %v3626_v23, %v3551_v7  ;;  %v1695_v32 = vsub.f32 %v3640_v38, %v3547_v2 }
 0x1b2   : > { %2155 = vst [vmem:[%s3542_s8 + $0x6c] sm:$0xff] %v2420_v9  ;;  %v1913_v61 = vmul.f32 1.442695, %v1810_v47  ;;  %v1875_v62 = vmul.f32 1.442695, %v1791_v56  ;;  %v1814_v36 = vmul.f32 %v1754_v59, %v1694_v1  ;;  %v1681_v0 = vsub.f32 %v3633_v30, %v3551_v7 }
 0x1b3   : > { %v2826_v5 = vpop.eup %2825  ;;  %2841 = vpow2.f32 %v1885_v54  ;;  %v1746_v43 = vmul.f32 -4.875, %v1686_v60  ;;  %v1755_v24 = vmul.f32 -4.875, %v1695_v32  ;;  %v1699_v10 = vsub.f32 %v3647_v57, %v3539_v63 }
 0x1b4   : > { %v2828_v11 = vpop.eup %2827  ;;  %v2409_v23 = vpack.c.bf16 %v2826_v5, %v2826_v5  ;;  %2843 = vpow2.f32 %v1913_v61  ;;  %v1921_v38 = vmul.f32 1.442695, %v1814_v36  ;;  %v1741_v51 = vmul.f32 -4.875, %v1681_v0 }
 0x1b5   : > { %v2830_v4 = vpop.eup %2829  ;;  %v2423_v16 = vpack.c.bf16 %v2828_v11, %v2824_v27  ;;  %2845 = vpow2.f32 %v1875_v62  ;;  %v1806_v25 = vmul.f32 %v1746_v43, %v1686_v60  ;;  %v1815_v30 = vmul.f32 %v1755_v24, %v1695_v32 }
 0x1b6   : > { %v2832_v17 = vpop.eup %2831  ;;  %2144 = vst [vmem:[%s3542_s8 + $0x24] sm:$0xf] %v2409_v23  ;;  %v2406_v37 = vpack.c.bf16 %v2830_v4, %v2830_v4  ;;  %2847 = vpow2.f32 %v1921_v38  ;;  %v1801_v18 = vmul.f32 %v1741_v51, %v1681_v0  ;;  %v1759_v14 = vmul.f32 -4.875, %v1699_v10 }
 0x1b7   : > { %v2834_v19 = vpop.eup %2833  ;;  %2158 = vst [vmem:[%s3542_s8 + $0x80] sm:$0xff] %v2423_v16  ;;  %v1905_v57 = vmul.f32 1.442695, %v1806_v25  ;;  %v1923_v20 = vmul.f32 1.442695, %v1815_v30  ;;  %v1696_v55 = vsub.f32 %v3645_v52, %v3551_v7  ;;  %v1700_v22 = vsub.f32 %v3654_v40, %v3547_v2 }
 0x1b8   : > { %v2836_v45 = vpop.eup %2835  ;;  %2141 = vst [vmem:[%s3542_s8 + $0x10] sm:$0xf] %v2406_v37  ;;  %v2415_v26 = vpack.c.bf16 %v2834_v19, %v2834_v19  ;;  %v1895_v48 = vmul.f32 1.442695, %v1801_v18  ;;  %v1819_v33 = vmul.f32 %v1759_v14, %v1699_v10  ;;  %v1691_v34 = vsub.f32 %v3649_v58, %v3551_v7 }
 0x1b9   : > { %v2838_v3 = vpop.eup %2837  ;;  %v2426_v28 = vpack.c.bf16 %v2836_v45, %v2832_v17  ;;  %2849 = vpow2.f32 %v1905_v57  ;;  %v1756_v8 = vmul.f32 -4.875, %v1696_v55  ;;  %v1760_v44 = vmul.f32 -4.875, %v1700_v22 }
 0x1ba   : > { %2150 = vst [vmem:[%s3542_s8 + $0x4c] sm:$0xf] %v2415_v26  ;;  %v2412_v52 = vpack.c.bf16 %v2838_v3, %v2838_v3  ;;  %2851 = vpow2.f32 %v1923_v20  ;;  %v1931_v13 = vmul.f32 1.442695, %v1819_v33  ;;  %v1751_v40 = vmul.f32 -4.875, %v1691_v34 }
 0x1bb   : > { %v2840_v46 = vpop.eup %2839  ;;  %2161 = vst [vmem:[%s3542_s8 + $0x94] sm:$0xff] %v2426_v28  ;;  %2853 = vpow2.f32 %v1895_v48  ;;  %v1816_v31 = vmul.f32 %v1756_v8, %v1696_v55  ;;  %v1820_v49 = vmul.f32 %v1760_v44, %v1700_v22  ;;  %v1704_v50 = vsub.f32 %v3663_v15, %v3539_v63 }
 0x1bc   : > { %2147 = vst [vmem:[%s3542_s8 + $0x38] sm:$0xf] %v2412_v52  ;;  %2855 = vpow2.f32 %v1931_v13  ;;  %v1811_v58 = vmul.f32 %v1751_v40, %v1691_v34  ;;  %v1706_v35 = vsub.f32 %v3659_v6, %v3551_v7  ;;  %v1705_v39 = vsub.f32 %v3667_v12, %v3547_v2 }
 0x1bd   : > { %v2842_v1 = vpop.eup %2841  ;;  %v1925_v21 = vmul.f32 1.442695, %v1816_v31  ;;  %v1933_v53 = vmul.f32 1.442695, %v1820_v49  ;;  %v1764_v41 = vmul.f32 -4.875, %v1704_v50  ;;  %v1701_v42 = vsub.f32 %v3665_v29, %v3551_v7 }
 0x1be   : > { %v2844_v9 = vpop.eup %2843  ;;  %v2421_v63 = vpack.c.bf16 %v2842_v1, %v2842_v1  ;;  %v1915_v15 = vmul.f32 1.442695, %v1811_v58  ;;  %v1766_v47 = vmul.f32 -4.875, %v1706_v35  ;;  %v1765_v56 = vmul.f32 -4.875, %v1705_v39 }
 0x1bf   : > { %v2846_v59 = vpop.eup %2845  ;;  %v2429_v6 = vpack.c.bf16 %v2844_v9, %v2840_v46  ;;  %2857 = vpow2.f32 %v1925_v21  ;;  %v1824_v27 = vmul.f32 %v1764_v41, %v1704_v50  ;;  %v1761_v2 = vmul.f32 -4.875, %v1701_v42 }
 0x1c0   : > { %v2848_v12 = vpop.eup %2847  ;;  %2156 = vst [vmem:[%s3542_s8 + $0x74] sm:$0xf] %v2421_v63  ;;  %v2418_v54 = vpack.c.bf16 %v2846_v59, %v2846_v59  ;;  %2859 = vpow2.f32 %v1933_v53  ;;  %v1826_v60 = vmul.f32 %v1766_v47, %v1706_v35  ;;  %v1825_v32 = vmul.f32 %v1765_v56, %v1705_v39 }
 0x1c1   : > { %2164 = vst [vmem:[%s3542_s8 + $0xa8] sm:$0xff] %v2429_v6  ;;  %2861 = vpow2.f32 %v1915_v15  ;;  %v1941_v7 = vmul.f32 1.442695, %v1824_v27  ;;  %v1821_v29 = vmul.f32 %v1761_v2, %v1701_v42 }
 0x1c2   : > { %2153 = vst [vmem:[%s3542_s8 + $0x60] sm:$0xf] %v2418_v54  ;;  %v1945_v61 = vmul.f32 1.442695, %v1826_v60  ;;  %v1943_v62 = vmul.f32 1.442695, %v1825_v32 }
 0x1c3   : > { %v2850_v36 = vpop.eup %2849  ;;  %2863 = vpow2.f32 %v1941_v7  ;;  %v1935_v0 = vmul.f32 1.442695, %v1821_v29 }
 0x1c4   : > { %v2852_v5 = vpop.eup %2851  ;;  %v2427_v43 = vpack.c.bf16 %v2850_v36, %v2850_v36  ;;  %2865 = vpow2.f32 %v1945_v61 }
 0x1c5   : > { %v2854_v24 = vpop.eup %2853  ;;  %v2432_v10 = vpack.c.bf16 %v2852_v5, %v2848_v12  ;;  %2867 = vpow2.f32 %v1943_v62 }
 0x1c6   : > { %v2856_v11 = vpop.eup %2855  ;;  %2162 = vst [vmem:[%s3542_s8 + $0x9c] sm:$0xf] %v2427_v43  ;;  %v2424_v23 = vpack.c.bf16 %v2854_v24, %v2854_v24  ;;  %2869 = vpow2.f32 %v1935_v0 }
 0x1c7   : > { %2167 = vst [vmem:[%s3542_s8 + $0xbc] sm:$0xff] %v2432_v10 }
 0x1c8   : > { %2159 = vst [vmem:[%s3542_s8 + $0x88] sm:$0xf] %v2424_v23 }
 0x1c9   : > { %v2858_v38 = vpop.eup %2857 }
 0x1ca   : > { %v2860_v51 = vpop.eup %2859  ;;  %v2433_v4 = vpack.c.bf16 %v2858_v38, %v2858_v38 }
 0x1cb   : > { %v2862_v16 = vpop.eup %2861  ;;  %v2435_v25 = vpack.c.bf16 %v2860_v51, %v2856_v11 }
 0x1cc   : > { %2168 = vst [vmem:[%s3542_s8 + $0xc4] sm:$0xf] %v2433_v4  ;;  %v2430_v30 = vpack.c.bf16 %v2862_v16, %v2862_v16 }
 0x1cd   : > { %v2864_v17 = vpop.eup %2863  ;;  %2170 = vst [vmem:[%s3542_s8 + $0xd0] sm:$0xff] %v2435_v25 }
 0x1ce   : > { %v2866_v37 = vpop.eup %2865  ;;  %2165 = vst [vmem:[%s3542_s8 + $0xb0] sm:$0xf] %v2430_v30 }
 0x1cf   : > { %v2868_v18 = vpop.eup %2867  ;;  %v2439_v14 = vpack.c.bf16 %v2866_v37, %v2866_v37 }
 0x1d0   : > { %v2870_v19 = vpop.eup %2869  ;;  %v2438_v57 = vpack.c.bf16 %v2868_v18, %v2864_v17 }
 0x1d1   : > { %2174 = vst [vmem:[%s3542_s8 + $0xec] sm:$0xf] %v2439_v14  ;;  %v2436_v20 = vpack.c.bf16 %v2870_v19, %v2870_v19 }
 0x1d2   : > { %2173 = vst [vmem:[%s3542_s8 + $0xe4] sm:$0xff] %v2438_v57 }
 0x1d3   : > { %2171 = vst [vmem:[%s3542_s8 + $0xd8] sm:$0xf] %v2436_v20 }
 0x1d4   : > { %2884 = shalt.err (!%p2881_p3)
}
 0x1d5   : > { %s2885_s27 = scalar_lea.hbm %s3725_s19, 3840  ;;  %s2889_s30 = scalar_lea.hbm %s3778_s3, 7680 }
 0x1d6   : > { %p2886_p4 = scmp.ne.s32.totalorder %s3725_s19, %s2885_s27  ;;  %p2890_p9 = scmp.lt.u32.totalorder %s3725_s19, %s3778_s3 }
 0x1d7   : > { %p2891_p10 = scmp.lt.u32.totalorder %s2889_s30, %s2885_s27  ;;  %p2893_p12 = scmp.lt.u32.totalorder %s2885_s27, %s3725_s19 }
 0x1d8   : > { %p2887_p7 = pnand %p2886_p4, %p2997_p5 }
 0x1d9   : > { %p2892_p11 = por %p2891_p10, %p2890_p9 }
 0x1da   : > { %p2888_p8 = pneg %p2887_p7 }
 0x1db   : > { %p2894_p13 = por %p2893_p12, %p2892_p11 }
 0x1dd   : > { %p2895_p0 = pnand %p2894_p13, %p2888_p8 }
 0x1df   : > { %2898 = shalt.err (!%p2895_p0)
}
 0x1e0   : > { %s2937_s6 = smov 320   ;;  %s2938_s7 = smov 20  }
 0x1e1   : > { %2708 = dma.vmem_to_hbm [thread:$0]  (%p2997_p5), %s3727_s10, 3840, %s3725_s19, %s3734_s16, %s2937_s6, %s2937_s6, %s2938_s7  }
 0x1e2 PF: > { %p2715_p1 = scmp.ge.s32.totalorder %s2933_s15, 2  ;;  %s2205_s8 = sand.u32 1, %s2921_s12  }
 0x1e3   : > { %s2206_s9 = scalar_lea.sflag [#allocation3], %s2205_s8 }
 0x1e4   : > { %p2711_p2 = pnand %p2715_p1, %p3001_p6 }
 0x1e6   : > { %2916 = dma.done.wait (!%p2711_p2), %s2206_s9, 3840  }
 0x1e7   : > { %2918 = vsyncadd (!%p2711_p2), %s2206_s9, 4294963456  ;;  %p13_p3 = scmp.ge.s32.totalorder %s2984_s18, 4   ;;  %s3781_s12 = smov %s2925_s13 }
 0x1e8   : > { %s3782_s13 = smov %s2929_s14  ;;  %s3783_s14 = smov %s2995_s21 }
 0x1e9   : > { %s3784_s15 = smov %s2984_s18  ;;  %15 = sbr.rel (!%p13_p3) target bundleno = 3 (0x3), region = 67 }
 0x1f0   :  { %2211 = vsyncpa [#allocation3], 1 }
 0x1f1   :  { %2213 = vsyncpa [#allocation3 + $0x1], 1 }

</bundles_post_ra>
